<compile_context>
chip_gen: v7x
topology: tpu7x:2x2x1
jax: 0.10.0
libtpu: 0.0.40
codegen_flags: <defaults>
</compile_context>

<pallas_src>
import jax
import jax.numpy as jnp
from functools import partial
from jax.experimental import pallas as pl
from jax.experimental.pallas import tpu as pltpu

LANE = 128      # TPU lane width: feature / class / node dims padded to this
SUBLANE = 8     # sublane multiple for the pair dimension


def _round_up(x, m):
    return ((x + m - 1) // m) * m


def _nbytes(shape, dtype):
    sz = 1
    for d in shape:
        sz *= int(d)
    return sz * jnp.dtype(dtype).itemsize


# ------------------------------ fused GCN kernel ----------------------------------
def _gcn_fused_kernel(n_layers,
                      a_hbm, h0_ref, w_ref, b_ref, s1_ref, s2_ref, w2_ref, b2_ref,
                      o_ref,
                      a_vmem, a_sem):
    # Single-buffered DMA of A_norm (HBM -> VMEM scratch), overlapped with the
    # layer-0 H @ W matmul which does not need A.
    a_cp = pltpu.make_async_copy(a_hbm, a_vmem, a_sem.at[0])
    a_cp.start()

    h = h0_ref[...]                                              # bf16 (N_pad, F_pad)
    hw = jnp.dot(h, w_ref[0],
                 preferred_element_type=jnp.float32).astype(jnp.bfloat16)

    a_cp.wait()
    a = a_vmem[...]                                              # bf16 (N_pad, N_pad)

    # GraphConv stack (unrolled; n_layers is small & static):
    #   H <- relu( A_norm @ (H @ W_l) + b_l )   -- f32 accumulate, bf16 carry
    for l in range(n_layers):
        agg = jnp.dot(a, hw, preferred_element_type=jnp.float32)
        h = jnp.maximum(agg + b_ref[l], 0.0).astype(jnp.bfloat16)
        if l + 1 < n_layers:
            hw = jnp.dot(h, w_ref[l + 1],
                         preferred_element_type=jnp.float32).astype(jnp.bfloat16)

    # MXU one-hot gather of the (x1, x2) rows: h1 = S1 @ H, h2 = S2 @ H.
    h1 = jnp.dot(s1_ref[...], h, preferred_element_type=jnp.float32)
    h2 = jnp.dot(s2_ref[...], h, preferred_element_type=jnp.float32)
    d = jnp.abs(h1 - h2)

    # cat([h1, h2, |h1-h2|], 1) @ W2  ==  h1 @ W2[0] + h2 @ W2[1] + |h1-h2| @ W2[2]
    out = jnp.dot(h1.astype(jnp.bfloat16), w2_ref[0], preferred_element_type=jnp.float32)
    out = out + jnp.dot(h2.astype(jnp.bfloat16), w2_ref[1], preferred_element_type=jnp.float32)
    out = out + jnp.dot(d.astype(jnp.bfloat16), w2_ref[2], preferred_element_type=jnp.float32)
    o_ref[...] = out + b2_ref[...]
    # TODO(synk): self.softmax is defined in __init__ but never applied in forward();
    #             logits are returned as-is, matching the PyTorch module.


# ------------------------------ parameter packing ---------------------------------
def pack_gcn_params(params, f_pad=LANE, c_pad=LANE):
    """One-time: stack + zero-pad weights/biases to lane-dense shapes; weights bf16."""
    layers = params["layers"]
    w_all = jnp.stack([
        jnp.pad(w.astype(jnp.float32),
                ((0, f_pad - w.shape[0]), (0, f_pad - w.shape[1])))
        for (w, _) in layers]).astype(jnp.bfloat16)               # (L, 128, 128) bf16
    b_all = jnp.stack([
        jnp.pad(b.astype(jnp.float32), (0, f_pad - b.shape[0]))[None, :]
        for (_, b) in layers])                                    # (L, 1, 128) f32
    n_hidden = layers[0][0].shape[1]
    n_classes = params["w2"].shape[1]
    w2 = params["w2"].astype(jnp.float32).reshape(3, n_hidden, n_classes)
    w2_pad = jnp.pad(w2, ((0, 0), (0, f_pad - n_hidden),
                          (0, c_pad - n_classes))).astype(jnp.bfloat16)   # (3,128,128)
    b2_pad = jnp.pad(params["b2"].astype(jnp.float32),
                     (0, c_pad - n_classes))[None, :]                     # (1, 128) f32
    return {"w": w_all, "b": b_all, "w2": w2_pad, "b2": b2_pad,
            "n_layers": len(layers), "n_classes": n_classes,
            "f_pad": f_pad, "c_pad": c_pad}


# ---------------------------------- full forward -----------------------------------
def gcn_forward(a_norm, h, x1, x2, packed):
    n, f_in = h.shape
    f_pad, c_pad = packed["f_pad"], packed["c_pad"]
    n_layers, n_classes = packed["n_layers"], packed["n_classes"]
    p = x1.shape[0]

    n_pad = _round_up(n, LANE)                    # lane-dense A, full MXU K tile
    p_pad = max(SUBLANE, _round_up(p, SUBLANE))   # unmasked output / gather stores

    # bf16 activations & adjacency (zero padding keeps semantics: padded A rows/cols
    # are zero, so padded nodes never feed real nodes and are never gathered).
    a_pad = jnp.pad(a_norm.astype(jnp.float32),
                    ((0, n_pad - n), (0, n_pad - n))).astype(jnp.bfloat16)
    h0 = jnp.pad(h.astype(jnp.float32),
                 ((0, n_pad - n), (0, f_pad - f_in))).astype(jnp.bfloat16)

    # One-hot row-selection matrices for the pair gather (runs on the MXU in-kernel).
    x1 = x1.astype(jnp.int32)
    x2 = x2.astype(jnp.int32)
    rows = jnp.arange(p)
    s1 = jnp.zeros((p_pad, n_pad), jnp.bfloat16).at[rows, x1].set(1.0)
    s2 = jnp.zeros((p_pad, n_pad), jnp.bfloat16).at[rows, x2].set(1.0)

    # VMEM budget: A scratch single-buffered; BlockSpec inputs/outputs double-buffered.
    footprint = (
        _nbytes((n_pad, n_pad), jnp.bfloat16)                       # A VMEM scratch
        + 2 * _nbytes((n_pad, f_pad), jnp.bfloat16)                 # H0
        + 2 * _nbytes((n_layers, f_pad, f_pad), jnp.bfloat16)       # layer W
        + 2 * _nbytes((n_layers, 1, f_pad), jnp.float32)            # layer b
        + 4 * _nbytes((p_pad, n_pad), jnp.bfloat16)                 # S1, S2
        + 2 * _nbytes((3, f_pad, c_pad), jnp.bfloat16)              # W2
        + 2 * _nbytes((1, c_pad), jnp.float32)                      # b2
        + 2 * _nbytes((p_pad, c_pad), jnp.float32)                  # out
    )
    # generation-safe ceiling (v7x has 64 MiB physical VMEM)
    vmem_limit = int(min(max(2 * footprint, 16 << 20), 48 << 20))

    kernel = partial(_gcn_fused_kernel, n_layers)
    full2 = lambda i: (0, 0)
    full3 = lambda i: (0, 0, 0)

    out_pad = pl.pallas_call(
        kernel,
        out_shape=jax.ShapeDtypeStruct((p_pad, c_pad), jnp.float32),
        grid_spec=pltpu.PrefetchScalarGridSpec(
            num_scalar_prefetch=0,
            grid=(1,),
            in_specs=[
                pl.BlockSpec(memory_space=pl.ANY),                      # A_norm (HBM)
                pl.BlockSpec((n_pad, f_pad), full2),                    # H0 (bf16)
                pl.BlockSpec((n_layers, f_pad, f_pad), full3),          # stacked layer W
                pl.BlockSpec((n_layers, 1, f_pad), full3),              # stacked layer b
                pl.BlockSpec((p_pad, n_pad), full2),                    # S1 one-hot
                pl.BlockSpec((p_pad, n_pad), full2),                    # S2 one-hot
                pl.BlockSpec((3, f_pad, c_pad), full3),                 # pair-head W2
                pl.BlockSpec((1, c_pad), full2),                        # pair-head b2
            ],
            out_specs=pl.BlockSpec((p_pad, c_pad), full2),
            scratch_shapes=[
                pltpu.VMEM((n_pad, n_pad), jnp.bfloat16),   # single-buffered A_norm
                pltpu.SemaphoreType.DMA((1,)),              # A DMA completion
            ]),
        compiler_params=pltpu.CompilerParams(
            dimension_semantics=("arbitrary",),
            vmem_limit_bytes=vmem_limit),
    )(a_pad, h0, packed["w"], packed["b"], s1, s2, packed["w2"], packed["b2"])

    # strip pair-row and lane padding off the logits
    return out_pad[:p, :n_classes]


# pure-JAX f32 reference (mirrors the PyTorch forward) for a correctness check
def gcn_forward_ref(a_norm, h, x1, x2, params):
    for (w, b) in params["layers"]:
        h = jnp.maximum(a_norm @ (h @ w) + b, 0.0)
    z = jnp.concatenate([h[x1], h[x2], jnp.abs(h[x1] - h[x2])], axis=1)
    return z @ params["w2"] + params["b2"]


if __name__ == "__main__":
    # small, deterministic shapes
    N = 64          # number of graph nodes
    IN_FEATS = 16
    N_HIDDEN = 32
    N_CLASSES = 4
    N_LAYERS = 2    # GraphConv(in->hidden) + (n_layers-1) GraphConv(hidden->hidden)
    P = 6           # number of (x1, x2) node pairs (exercises sublane padding)

    key = jax.random.PRNGKey(0)
    k_adj, k_h, k_x1, k_x2, k_w = jax.random.split(key, 5)

    # deterministic synthetic graph: symmetric adjacency with self-loops, norm='both'
    adj = (jax.random.uniform(k_adj, (N, N)) < 0.1).astype(jnp.float32)
    adj = jnp.maximum(adj, adj.T)
    adj = jnp.maximum(adj, jnp.eye(N, dtype=jnp.float32))   # self-loops -> no zero degree
    deg = adj.sum(axis=1)
    d_inv_sqrt = 1.0 / jnp.sqrt(deg)
    a_norm = adj * d_inv_sqrt[:, None] * d_inv_sqrt[None, :]

    h = jax.random.normal(k_h, (N, IN_FEATS), dtype=jnp.float32)
    x1 = jax.random.randint(k_x1, (P,), 0, N)
    x2 = jax.random.randint(k_x2, (P,), 0, N)

    # deterministic parameter init (synthetic; shapes match the PyTorch module)
    wkeys = jax.random.split(k_w, N_LAYERS + 1)
    layers = []
    fin = IN_FEATS
    for li in range(N_LAYERS):
        w = jax.random.normal(wkeys[li], (fin, N_HIDDEN), dtype=jnp.float32) * 0.1
        b = jnp.full((N_HIDDEN,), 0.01, dtype=jnp.float32)
        layers.append((w, b))
        fin = N_HIDDEN
    w2 = jax.random.normal(wkeys[-1], (3 * N_HIDDEN, N_CLASSES), dtype=jnp.float32) * 0.1
    b2 = jnp.full((N_CLASSES,), 0.02, dtype=jnp.float32)
    params = {"layers": layers, "w2": w2, "b2": b2}

    packed = pack_gcn_params(params)          # one-time weight packing / lane padding
    out = gcn_forward(a_norm, h, x1, x2, packed)
    out = jax.block_until_ready(out)

    ref = gcn_forward_ref(a_norm, h, x1, x2, params)
    assert out.shape == (P, N_CLASSES), out.shape
    # bf16 storage / f32 accumulation: loose but meaningful tolerance vs. f32 reference
    assert jnp.allclose(out, ref, atol=2e-2, rtol=2e-2), \
        float(jnp.max(jnp.abs(out - ref)))

    print("KERNEL_OK")
</pallas_src>

<mosaic_0001>
module attributes {stable_mosaic.version = 11 : i64} {
  func.func @_gcn_fused_kernel(%arg0: i32, %arg1: memref<128x128xbf16, #tpu.memory_space<any>>, %arg2: memref<128x128xbf16, #tpu.memory_space<vmem>>, %arg3: memref<2x128x128xbf16, #tpu.memory_space<vmem>>, %arg4: memref<2x1x128xf32, #tpu.memory_space<vmem>>, %arg5: memref<8x128xbf16, #tpu.memory_space<vmem>>, %arg6: memref<8x128xbf16, #tpu.memory_space<vmem>>, %arg7: memref<3x128x128xbf16, #tpu.memory_space<vmem>>, %arg8: memref<1x128xf32, #tpu.memory_space<vmem>>, %arg9: memref<8x128xf32, #tpu.memory_space<vmem>>, %arg10: memref<128x128xbf16, #tpu.memory_space<vmem>>, %arg11: memref<1x!tpu.dma_semaphore, #tpu.memory_space<semaphore_mem>>) attributes {dimension_semantics = [#tpu.dimension_semantics<arbitrary>], iteration_bounds = array<i64: 1>, scalar_prefetch = 0 : i64, scratch_operands = 2 : i64, tpu.core_type = #tpu.core_type<tc>, window_params = [{}, {pipeline_mode = #tpu.pipeline_mode<synchronous>, transform_indices = @transform_1, window_bounds = array<i64: 128, 128>}, {pipeline_mode = #tpu.pipeline_mode<synchronous>, transform_indices = @transform_2, window_bounds = array<i64: 2, 128, 128>}, {pipeline_mode = #tpu.pipeline_mode<synchronous>, transform_indices = @transform_3, window_bounds = array<i64: 2, 1, 128>}, {pipeline_mode = #tpu.pipeline_mode<synchronous>, transform_indices = @transform_4, window_bounds = array<i64: 8, 128>}, {pipeline_mode = #tpu.pipeline_mode<synchronous>, transform_indices = @transform_5, window_bounds = array<i64: 8, 128>}, {pipeline_mode = #tpu.pipeline_mode<synchronous>, transform_indices = @transform_6, window_bounds = array<i64: 3, 128, 128>}, {pipeline_mode = #tpu.pipeline_mode<synchronous>, transform_indices = @transform_7, window_bounds = array<i64: 1, 128>}, {pipeline_mode = #tpu.pipeline_mode<synchronous>, transform_indices = @transform_8, window_bounds = array<i64: 8, 128>}]} {
    %c0_i32 = arith.constant 0 : i32
    %0 = tpu.memref_slice %arg11[%c0_i32] : memref<1x!tpu.dma_semaphore, #tpu.memory_space<semaphore_mem>> -> memref<1x!tpu.dma_semaphore, #tpu.memory_space<semaphore_mem>>
    %1 = tpu.memref_squeeze %0 : memref<1x!tpu.dma_semaphore, #tpu.memory_space<semaphore_mem>> -> memref<!tpu.dma_semaphore, #tpu.memory_space<semaphore_mem>>
    tpu.enqueue_dma source(%arg1 : memref<128x128xbf16, #tpu.memory_space<any>>) target(%arg10 : memref<128x128xbf16, #tpu.memory_space<vmem>>) target_semaphore(%1 : memref<!tpu.dma_semaphore, #tpu.memory_space<semaphore_mem>>)
    %c0 = arith.constant 0 : index
    %c0_0 = arith.constant 0 : index
    %2 = vector.load %arg2[%c0, %c0_0] : memref<128x128xbf16, #tpu.memory_space<vmem>>, vector<128x128xbf16>
    %c0_1 = arith.constant 0 : index
    %c0_2 = arith.constant 0 : index
    %c0_3 = arith.constant 0 : index
    %3 = vector.load %arg3[%c0_1, %c0_2, %c0_3] : memref<2x128x128xbf16, #tpu.memory_space<vmem>>, vector<1x128x128xbf16>
    %4 = vector.shape_cast %3 : vector<1x128x128xbf16> to vector<128x128xbf16>
    %cst = arith.constant dense<0.000000e+00> : vector<128x128xf32>
    %5 = tpu.matmul %2, %4, %cst {dimension_numbers = #tpu.dot_dimension_numbers<[1], [0], [0], [1], [0, 0, 1, 1], [], []>} : vector<128x128xbf16>, vector<128x128xbf16>, vector<128x128xf32> -> vector<128x128xf32>
    %6 = arith.truncf %5 : vector<128x128xf32> to vector<128x128xbf16>
    %c0_i32_4 = arith.constant 0 : i32
    %7 = tpu.memref_slice %arg11[%c0_i32_4] : memref<1x!tpu.dma_semaphore, #tpu.memory_space<semaphore_mem>> -> memref<1x!tpu.dma_semaphore, #tpu.memory_space<semaphore_mem>>
    %8 = tpu.memref_squeeze %7 : memref<1x!tpu.dma_semaphore, #tpu.memory_space<semaphore_mem>> -> memref<!tpu.dma_semaphore, #tpu.memory_space<semaphore_mem>>
    tpu.wait_dma2 semaphore(%8 : memref<!tpu.dma_semaphore, #tpu.memory_space<semaphore_mem>>) src(%arg1 : memref<128x128xbf16, #tpu.memory_space<any>>) dst(%arg10 : memref<128x128xbf16, #tpu.memory_space<vmem>>)
    %c0_5 = arith.constant 0 : index
    %c0_6 = arith.constant 0 : index
    %9 = vector.load %arg10[%c0_5, %c0_6] : memref<128x128xbf16, #tpu.memory_space<vmem>>, vector<128x128xbf16>
    %cst_7 = arith.constant dense<0.000000e+00> : vector<128x128xf32>
    %10 = tpu.matmul %9, %6, %cst_7 {dimension_numbers = #tpu.dot_dimension_numbers<[1], [0], [0], [1], [0, 0, 1, 1], [], []>} : vector<128x128xbf16>, vector<128x128xbf16>, vector<128x128xf32> -> vector<128x128xf32>
    %c0_8 = arith.constant 0 : index
    %c0_9 = arith.constant 0 : index
    %c0_10 = arith.constant 0 : index
    %11 = vector.load %arg4[%c0_8, %c0_9, %c0_10] : memref<2x1x128xf32, #tpu.memory_space<vmem>>, vector<1x1x128xf32>
    %12 = vector.shape_cast %11 : vector<1x1x128xf32> to vector<1x128xf32>
    %13 = vector.broadcast %12 : vector<1x128xf32> to vector<128x128xf32>
    %14 = arith.addf %10, %13 : vector<128x128xf32>
    %cst_11 = arith.constant 0.000000e+00 : f32
    %15 = vector.broadcast %cst_11 : f32 to vector<128x128xf32>
    %16 = arith.maximumf %14, %15 : vector<128x128xf32>
    %17 = arith.truncf %16 : vector<128x128xf32> to vector<128x128xbf16>
    %c1 = arith.constant 1 : index
    %c0_12 = arith.constant 0 : index
    %c0_13 = arith.constant 0 : index
    %18 = vector.load %arg3[%c1, %c0_12, %c0_13] : memref<2x128x128xbf16, #tpu.memory_space<vmem>>, vector<1x128x128xbf16>
    %19 = vector.shape_cast %18 : vector<1x128x128xbf16> to vector<128x128xbf16>
    %cst_14 = arith.constant dense<0.000000e+00> : vector<128x128xf32>
    %20 = tpu.matmul %17, %19, %cst_14 {dimension_numbers = #tpu.dot_dimension_numbers<[1], [0], [0], [1], [0, 0, 1, 1], [], []>} : vector<128x128xbf16>, vector<128x128xbf16>, vector<128x128xf32> -> vector<128x128xf32>
    %21 = arith.truncf %20 : vector<128x128xf32> to vector<128x128xbf16>
    %cst_15 = arith.constant dense<0.000000e+00> : vector<128x128xf32>
    %22 = tpu.matmul %9, %21, %cst_15 {dimension_numbers = #tpu.dot_dimension_numbers<[1], [0], [0], [1], [0, 0, 1, 1], [], []>} : vector<128x128xbf16>, vector<128x128xbf16>, vector<128x128xf32> -> vector<128x128xf32>
    %c1_16 = arith.constant 1 : index
    %c0_17 = arith.constant 0 : index
    %c0_18 = arith.constant 0 : index
    %23 = vector.load %arg4[%c1_16, %c0_17, %c0_18] : memref<2x1x128xf32, #tpu.memory_space<vmem>>, vector<1x1x128xf32>
    %24 = vector.shape_cast %23 : vector<1x1x128xf32> to vector<1x128xf32>
    %25 = vector.broadcast %24 : vector<1x128xf32> to vector<128x128xf32>
    %26 = arith.addf %22, %25 : vector<128x128xf32>
    %cst_19 = arith.constant 0.000000e+00 : f32
    %27 = vector.broadcast %cst_19 : f32 to vector<128x128xf32>
    %28 = arith.maximumf %26, %27 : vector<128x128xf32>
    %29 = arith.truncf %28 : vector<128x128xf32> to vector<128x128xbf16>
    %c0_20 = arith.constant 0 : index
    %c0_21 = arith.constant 0 : index
    %30 = vector.load %arg5[%c0_20, %c0_21] : memref<8x128xbf16, #tpu.memory_space<vmem>>, vector<8x128xbf16>
    %cst_22 = arith.constant dense<0.000000e+00> : vector<8x128xf32>
    %31 = tpu.matmul %30, %29, %cst_22 {dimension_numbers = #tpu.dot_dimension_numbers<[1], [0], [0], [1], [0, 0, 1, 1], [], []>} : vector<8x128xbf16>, vector<128x128xbf16>, vector<8x128xf32> -> vector<8x128xf32>
    %c0_23 = arith.constant 0 : index
    %c0_24 = arith.constant 0 : index
    %32 = vector.load %arg6[%c0_23, %c0_24] : memref<8x128xbf16, #tpu.memory_space<vmem>>, vector<8x128xbf16>
    %cst_25 = arith.constant dense<0.000000e+00> : vector<8x128xf32>
    %33 = tpu.matmul %32, %29, %cst_25 {dimension_numbers = #tpu.dot_dimension_numbers<[1], [0], [0], [1], [0, 0, 1, 1], [], []>} : vector<8x128xbf16>, vector<128x128xbf16>, vector<8x128xf32> -> vector<8x128xf32>
    %34 = arith.subf %31, %33 : vector<8x128xf32>
    %35 = math.absf %34 : vector<8x128xf32>
    %36 = arith.truncf %31 : vector<8x128xf32> to vector<8x128xbf16>
    %c0_26 = arith.constant 0 : index
    %c0_27 = arith.constant 0 : index
    %c0_28 = arith.constant 0 : index
    %37 = vector.load %arg7[%c0_26, %c0_27, %c0_28] : memref<3x128x128xbf16, #tpu.memory_space<vmem>>, vector<1x128x128xbf16>
    %38 = vector.shape_cast %37 : vector<1x128x128xbf16> to vector<128x128xbf16>
    %cst_29 = arith.constant dense<0.000000e+00> : vector<8x128xf32>
    %39 = tpu.matmul %36, %38, %cst_29 {dimension_numbers = #tpu.dot_dimension_numbers<[1], [0], [0], [1], [0, 0, 1, 1], [], []>} : vector<8x128xbf16>, vector<128x128xbf16>, vector<8x128xf32> -> vector<8x128xf32>
    %40 = arith.truncf %33 : vector<8x128xf32> to vector<8x128xbf16>
    %c1_30 = arith.constant 1 : index
    %c0_31 = arith.constant 0 : index
    %c0_32 = arith.constant 0 : index
    %41 = vector.load %arg7[%c1_30, %c0_31, %c0_32] : memref<3x128x128xbf16, #tpu.memory_space<vmem>>, vector<1x128x128xbf16>
    %42 = vector.shape_cast %41 : vector<1x128x128xbf16> to vector<128x128xbf16>
    %cst_33 = arith.constant dense<0.000000e+00> : vector<8x128xf32>
    %43 = tpu.matmul %40, %42, %cst_33 {dimension_numbers = #tpu.dot_dimension_numbers<[1], [0], [0], [1], [0, 0, 1, 1], [], []>} : vector<8x128xbf16>, vector<128x128xbf16>, vector<8x128xf32> -> vector<8x128xf32>
    %44 = arith.addf %39, %43 : vector<8x128xf32>
    %45 = arith.truncf %35 : vector<8x128xf32> to vector<8x128xbf16>
    %c2 = arith.constant 2 : index
    %c0_34 = arith.constant 0 : index
    %c0_35 = arith.constant 0 : index
    %46 = vector.load %arg7[%c2, %c0_34, %c0_35] : memref<3x128x128xbf16, #tpu.memory_space<vmem>>, vector<1x128x128xbf16>
    %47 = vector.shape_cast %46 : vector<1x128x128xbf16> to vector<128x128xbf16>
    %cst_36 = arith.constant dense<0.000000e+00> : vector<8x128xf32>
    %48 = tpu.matmul %45, %47, %cst_36 {dimension_numbers = #tpu.dot_dimension_numbers<[1], [0], [0], [1], [0, 0, 1, 1], [], []>} : vector<8x128xbf16>, vector<128x128xbf16>, vector<8x128xf32> -> vector<8x128xf32>
    %49 = arith.addf %44, %48 : vector<8x128xf32>
    %c0_37 = arith.constant 0 : index
    %c0_38 = arith.constant 0 : index
    %50 = vector.load %arg8[%c0_37, %c0_38] : memref<1x128xf32, #tpu.memory_space<vmem>>, vector<1x128xf32>
    %51 = vector.broadcast %50 : vector<1x128xf32> to vector<8x128xf32>
    %52 = arith.addf %49, %51 : vector<8x128xf32>
    %c0_39 = arith.constant 0 : index
    %c0_40 = arith.constant 0 : index
    %53 = vector.load %arg9[%c0_39, %c0_40] : memref<8x128xf32, #tpu.memory_space<vmem>>, vector<8x128xf32>
    tpu.vector_store %arg9[%c0_39, %c0_40], %52 {strides = array<i32>} : memref<8x128xf32, #tpu.memory_space<vmem>>, vector<8x128xf32>,
    return
  }
  func.func @transform_1(%arg0: i32) -> (i32, i32) {
    %c0_i32 = arith.constant 0 : i32
    %c0_i32_0 = arith.constant 0 : i32
    %c0_i32_1 = arith.constant 0 : i32
    return %c0_i32, %c0_i32_0 : i32, i32
  }
  func.func @transform_2(%arg0: i32) -> (i32, i32, i32) {
    %c0_i32 = arith.constant 0 : i32
    %c0_i32_0 = arith.constant 0 : i32
    %c0_i32_1 = arith.constant 0 : i32
    %c0_i32_2 = arith.constant 0 : i32
    return %c0_i32, %c0_i32_0, %c0_i32_1 : i32, i32, i32
  }
  func.func @transform_3(%arg0: i32) -> (i32, i32, i32) {
    %c0_i32 = arith.constant 0 : i32
    %c0_i32_0 = arith.constant 0 : i32
    %c0_i32_1 = arith.constant 0 : i32
    %c0_i32_2 = arith.constant 0 : i32
    return %c0_i32, %c0_i32_0, %c0_i32_1 : i32, i32, i32
  }
  func.func @transform_4(%arg0: i32) -> (i32, i32) {
    %c0_i32 = arith.constant 0 : i32
    %c0_i32_0 = arith.constant 0 : i32
    %c0_i32_1 = arith.constant 0 : i32
    return %c0_i32, %c0_i32_0 : i32, i32
  }
  func.func @transform_5(%arg0: i32) -> (i32, i32) {
    %c0_i32 = arith.constant 0 : i32
    %c0_i32_0 = arith.constant 0 : i32
    %c0_i32_1 = arith.constant 0 : i32
    return %c0_i32, %c0_i32_0 : i32, i32
  }
  func.func @transform_6(%arg0: i32) -> (i32, i32, i32) {
    %c0_i32 = arith.constant 0 : i32
    %c0_i32_0 = arith.constant 0 : i32
    %c0_i32_1 = arith.constant 0 : i32
    %c0_i32_2 = arith.constant 0 : i32
    return %c0_i32, %c0_i32_0, %c0_i32_1 : i32, i32, i32
  }
  func.func @transform_7(%arg0: i32) -> (i32, i32) {
    %c0_i32 = arith.constant 0 : i32
    %c0_i32_0 = arith.constant 0 : i32
    %c0_i32_1 = arith.constant 0 : i32
    return %c0_i32, %c0_i32_0 : i32, i32
  }
  func.func @transform_8(%arg0: i32) -> (i32, i32) {
    %c0_i32 = arith.constant 0 : i32
    %c0_i32_0 = arith.constant 0 : i32
    %c0_i32_1 = arith.constant 0 : i32
    return %c0_i32, %c0_i32_0 : i32, i32
  }
}

</mosaic_0001>

<bundles_post_ra>
// kernel: tpu_custom_call.1
= control target key start
LH: loop header
LB: loop body
LE: loop exit
PB: predicated region body
PF: predicated region fallthrough
CT: control target
= control target key end

     0   :  { %13 = vsyncpa [#allocation5], 0  ;;  %s1992_s0 = inlined_call_operand.hbm [shape: bf16[128,128], index: 0, kind: input, shape index: {}]   ;;  %s1993_s1 = inlined_call_operand.hbm [shape: bf16[128,128], index: 1, kind: input, shape index: {}]   ;;  %s1994_s2 = inlined_call_operand.hbm [shape: bf16[2,128,128], index: 2, kind: input, shape index: {}]   ;;  %s1995_s3 = inlined_call_operand.vmem [shape: f32[2,1,128], index: 3, kind: input, shape index: {}]   ;;  %s1996_s4 = inlined_call_operand.vmem [shape: bf16[8,128], index: 4, kind: input, shape index: {}]   ;;  %s1997_s5 = inlined_call_operand.vmem [shape: bf16[8,128], index: 5, kind: input, shape index: {}]   ;;  %s1998_s6 = inlined_call_operand.hbm [shape: bf16[3,128,128], index: 6, kind: input, shape index: {}]   ;;  %s1999_s7 = inlined_call_operand.vmem [shape: f32[1,128], index: 7, kind: input, shape index: {}]   ;;  %s2000_s8 = inlined_call_operand.hbm [shape: f32[8,128], index: 8, kind: output, shape index: {}]  }
   0x1   :  { %14 = vsyncpa [#allocation8], 0 }
   0x2   :  { %15 = vsyncpa [#allocation6], 0  ;;  %s1751_s27 = smov [#allocation7]   ;;  %s1752_s29 = smov [#allocation4]  }
   0x3   :  { %s33_s28 = sshll.u32 %s1751_s27, 4  ;;  %s21_s30 = sshll.u32 %s1752_s29, 4  ;;  %s34_s28 = int_to_ptr.vmem [resolvable:$true] %s33_s28  ;;  %s1805_s30 = int_to_ptr.vmem [resolvable:$true] %s21_s30 }
   0x4   :  { %s1633_s11 = scalar_lea.hbm %s1994_s2, 2048 }
   0x5   :  { %p1634_p0 = scmp.ne.s32.totalorder %s1994_s2, %s1633_s11  ;;  %p1637_p1 = scmp.lt.u32.totalorder %s1633_s11, %s1994_s2 }
   0x7   :  { %p1639_p2 = pnand %p1637_p1, %p1634_p0 }
   0x9   :  { %1642 = shalt.err (!%p1639_p2)
}
   0xa   :  { %s1643_s16 = scalar_lea.vmem %s34_s28, 2048  ;;  %p1648_p4 = scmp.lt.s32.totalorder %s34_s28, %s34_s28 }
   0xb   :  { %p1644_p3 = scmp.ne.s32.totalorder %s34_s28, %s1643_s16  ;;  %p1649_p5 = scmp.lt.s32.totalorder %s1643_s16, %s1643_s16 }
   0xd   :  { %p1650_p6 = por %p1649_p5, %p1648_p4 }
   0xf   :  { %p1651_p7 = pnand %p1650_p6, %p1644_p3 }
  0x11   :  { %1654 = shalt.err (!%p1651_p7)
}
  0x12   :  { %s1753_s17 = smov 64   ;;  %s1754_s18 = smov 4  }
  0x13   :  { %39 = dma.hbm_to_vmem [thread:$0]  %s1994_s2, 2048, %s34_s28, [#allocation8], %s1753_s17, %s1753_s17, %s1754_s18  }
  0x14   :  { %s1655_s23 = scalar_lea.hbm %s1993_s1, 1024 }
  0x15   :  { %p1656_p8 = scmp.ne.s32.totalorder %s1993_s1, %s1655_s23  ;;  %p1659_p9 = scmp.lt.u32.totalorder %s1655_s23, %s1993_s1 }
  0x17   :  { %p1661_p10 = pnand %p1659_p9, %p1656_p8 }
  0x19   :  { %1664 = shalt.err (!%p1661_p10)
}
  0x1a   :  { %s1665_s29 = scalar_lea.vmem %s1805_s30, 1024  ;;  %p1670_p12 = scmp.lt.s32.totalorder %s1805_s30, %s1805_s30 }
  0x1b   :  { %p1666_p11 = scmp.ne.s32.totalorder %s1805_s30, %s1665_s29  ;;  %p1671_p13 = scmp.lt.s32.totalorder %s1665_s29, %s1665_s29 }
  0x1d   :  { %p1672_p0 = por %p1671_p13, %p1670_p12 }
  0x1f   :  { %p1673_p1 = pnand %p1672_p0, %p1666_p11 }
  0x21   :  { %1676 = shalt.err (!%p1673_p1)
}
  0x22   :  { %27 = dma.hbm_to_vmem [thread:$0]  %s1993_s1, 1024, %s1805_s30, [#allocation5], %s1753_s17, %s1753_s17, %s1754_s18  }
  0x23   :  { %s1755_s9 = smov [#allocation9]   ;;  %s1677_s13 = scalar_lea.hbm %s1998_s6, 3072 }
  0x24   :  { %s51_s10 = sshll.u32 %s1755_s9, 4  ;;  %p1678_p2 = scmp.ne.s32.totalorder %s1998_s6, %s1677_s13  ;;  %s52_s10 = int_to_ptr.vmem [resolvable:$true] %s51_s10 }
  0x25   :  { %p1681_p3 = scmp.lt.u32.totalorder %s1677_s13, %s1998_s6 }
  0x27   :  { %p1683_p4 = pnand %p1681_p3, %p1678_p2 }
  0x29   :  { %1686 = shalt.err (!%p1683_p4)
}
  0x2a   :  { %s1687_s20 = scalar_lea.vmem %s52_s10, 3072  ;;  %p1692_p6 = scmp.lt.s32.totalorder %s52_s10, %s52_s10 }
  0x2b   :  { %p1688_p5 = scmp.ne.s32.totalorder %s52_s10, %s1687_s20  ;;  %p1693_p7 = scmp.lt.s32.totalorder %s1687_s20, %s1687_s20 }
  0x2d   :  { %p1694_p8 = por %p1693_p7, %p1692_p6 }
  0x2f   :  { %p1695_p9 = pnand %p1694_p8, %p1688_p5 }
  0x31   :  { %1698 = shalt.err (!%p1695_p9)
}
  0x32   :  { %57 = dma.hbm_to_vmem [thread:$0]  %s1998_s6, 3072, %s52_s10, [#allocation8], %s1753_s17, %s1753_s17, %s1754_s18  }
  0x33   :  { %1743 = dma.done.wait [#allocation5], 1024  }
  0x34   :  { %1744 = vsyncadd [#allocation5], 4294966272 }
  0x35   :  { %1745 = dma.done.wait [#allocation8], 5120  }
  0x36   :  { %1746 = vsyncadd [#allocation8], 4294962176  ;;  %v1585_v0 = vld [vmem:[#allocation7] sm:$0xff]   ;;  %v1586_v1 = vld [vmem:[#allocation7 + $0x8] sm:$0xff]   ;;  %s1756_s6 = smov [#allocation2]   ;;  %s1699_s22 = scalar_lea.hbm %s1992_s0, 1024 }
  0x37   :  { %1348 = vmatprep.subr.bf16.mxu0 %v1585_v0  ;;  %v1587_v2 = vld [vmem:[#allocation7 + $0x10] sm:$0xff]   ;;  %v1588_v3 = vld [vmem:[#allocation7 + $0x18] sm:$0xff]   ;;  %v1593_v4 = vld [vmem:[#allocation4] sm:$0xff]   ;;  %s77_s17 = sshll.u32 %s1756_s6, 4  ;;  %p1700_p10 = scmp.ne.s32.totalorder %s1992_s0, %s1699_s22  ;;  %s78_s17 = int_to_ptr.vmem [resolvable:$true] %s77_s17 }
  0x38   :  { %1349 = vmatpush3.bf16.msra.mxu0 %v1585_v0  ;;  %1364 = vmatprep.mubr.bf16.mxu0 %v1593_v4  ;;  %v1589_v5 = vld [vmem:[#allocation7 + $0x20] sm:$0xff]   ;;  %v1590_v6 = vld [vmem:[#allocation7 + $0x28] sm:$0xff]   ;;  %v1591_v7 = vld [vmem:[#allocation7 + $0x30] sm:$0xff]   ;;  %p1703_p11 = scmp.lt.u32.totalorder %s1699_s22, %s1992_s0 }
  0x39   :  { %1350 = vmatprep.subr.bf16.mxu0 %v1586_v1  ;;  %v1592_v8 = vld [vmem:[#allocation7 + $0x38] sm:$0xff]   ;;  %v1594_v9 = vld [vmem:[#allocation4 + $0x8] sm:$0xff]   ;;  %v1595_v10 = vld [vmem:[#allocation4 + $0x10] sm:$0xff]  }
  0x3a   :  { %v1596_v11 = vld [vmem:[#allocation4 + $0x18] sm:$0xff]   ;;  %v1597_v12 = vld [vmem:[#allocation4 + $0x20] sm:$0xff]   ;;  %v1598_v13 = vld [vmem:[#allocation4 + $0x28] sm:$0xff]   ;;  %p1705_p12 = pnand %p1703_p11, %p1700_p10 }
  0x3b   :  { %v1599_v14 = vld [vmem:[#allocation4 + $0x30] sm:$0xff]   ;;  %v1600_v15 = vld [vmem:[#allocation4 + $0x38] sm:$0xff]  }
  0x3c   :  { %1351 = vmatpush3.bf16.msra.mxu0 %v1586_v1 }
  0x3d   :  { %1352 = vmatprep.subr.bf16.mxu0 %v1587_v2 }
  0x40   :  { %1353 = vmatpush3.bf16.msra.mxu0 %v1587_v2 }
  0x41   :  { %1354 = vmatprep.subr.bf16.mxu0 %v1588_v3 }
  0x44   :  { %1355 = vmatpush3.bf16.msra.mxu0 %v1588_v3 }
  0x45   :  { %1356 = vmatprep.subr.bf16.mxu0 %v1589_v5 }
  0x48   :  { %1357 = vmatpush3.bf16.msra.mxu0 %v1589_v5 }
  0x49   :  { %1358 = vmatprep.subr.bf16.mxu0 %v1590_v6 }
  0x4c   :  { %1359 = vmatpush3.bf16.msra.mxu0 %v1590_v6 }
  0x4d   :  { %1360 = vmatprep.subr.bf16.mxu0 %v1591_v7 }
  0x50   :  { %1361 = vmatpush3.bf16.msra.mxu0 %v1591_v7 }
  0x51   :  { %1362 = vmatprep.subr.bf16.mxu0 %v1592_v8 }
  0x54   :  { %1363 = vmatpush3.bf16.msra.mxu0 %v1592_v8 }
  0x57   :  { %1365 = vmatmul.mubr.bf16.vlgmr.msra.gmra.mrb[0].mxu0 %v1594_v9 }
  0x58   :  { %1368 = vmatprep.mubr.bf16.mxu0 %v1595_v10 }
  0x5f   :  { %1369 = vmatmul.mubr.bf16.gmra.mrb[4].mxu0 %v1596_v11 }
  0x60   :  { %1372 = vmatprep.mubr.bf16.mxu0 %v1597_v12 }
  0x67   :  { %1373 = vmatmul.mubr.bf16.gmra.mrb[8].mxu0 %v1598_v13 }
  0x68   :  { %1376 = vmatprep.mubr.bf16.mxu0 %v1599_v14 }
  0x6f   :  { %1377 = vmatmul.mubr.bf16.gmra.mrb[12].mxu0 %v1600_v15 }
  0x70   :  { %1708 = shalt.err (!%p1705_p12)  }
  0x71   :  { %s1709_s27 = scalar_lea.vmem %s78_s17, 1024  ;;  %p1714_p0 = scmp.lt.s32.totalorder %s78_s17, %s78_s17 }
  0x72   :  { %p1710_p13 = scmp.ne.s32.totalorder %s78_s17, %s1709_s27  ;;  %p1715_p1 = scmp.lt.s32.totalorder %s1709_s27, %s1709_s27 }
  0x74   :  { %p1716_p2 = por %p1715_p1, %p1714_p0 }
  0x76   :  { %p1717_p3 = pnand %p1716_p2, %p1710_p13 }
  0x78   :  { %1720 = shalt.err (!%p1717_p3)  }
  0x79   :  { %80 = dma.hbm_to_vmem [thread:$0]  %s1992_s0, 1024, %s78_s17, [#allocation3] }
 0x12a   :  { %v1366_v16 = vpop.f32.mrb[0].mxu0 }
 0x12b   :  { %v243_v17 = vpop.f32.mrb[1].mxu0 }
 0x12c   :  { %v1367_v18 = vpop.f32.mrb[2].mxu0 }
 0x12d   :  { %v307_v19 = vpack.c.bf16 %v1367_v18, %v1366_v16  ;;  %v246_v20 = vpop.f32.mrb[3].mxu0 }
 0x12e   :  { %v306_v21 = vpack.c.bf16 %v246_v20, %v243_v17 }
 0x130   :  { %1380 = vmatprep.subr.bf16.mxu1 %v306_v21 }
 0x132   :  { %v1370_v22 = vpop.f32.mrb[4].mxu0 }
 0x133   :  { %v259_v23 = vpop.f32.mrb[5].mxu0 }
 0x134   :  { %v1371_v24 = vpop.f32.mrb[6].mxu0 }
 0x135   :  { %v309_v25 = vpack.c.bf16 %v1371_v24, %v1370_v22  ;;  %v262_v26 = vpop.f32.mrb[7].mxu0 }
 0x136   :  { %v308_v27 = vpack.c.bf16 %v262_v26, %v259_v23 }
 0x13a   :  { %v1374_v28 = vpop.f32.mrb[8].mxu0 }
 0x13b   :  { %v275_v29 = vpop.f32.mrb[9].mxu0 }
 0x13c   :  { %v1375_v30 = vpop.f32.mrb[10].mxu0 }
 0x13d   :  { %v311_v31 = vpack.c.bf16 %v1375_v30, %v1374_v28  ;;  %v278_v32 = vpop.f32.mrb[11].mxu0 }
 0x13e   :  { %v310_v33 = vpack.c.bf16 %v278_v32, %v275_v29 }
 0x142   :  { %v1378_v34 = vpop.f32.mrb[12].mxu0 }
 0x143   :  { %v291_v35 = vpop.f32.mrb[13].mxu0 }
 0x144   :  { %v1379_v36 = vpop.f32.mrb[14].mxu0 }
 0x145   :  { %v313_v37 = vpack.c.bf16 %v1379_v36, %v1378_v34  ;;  %v294_v38 = vpop.f32.mrb[15].mxu0 }
 0x146   :  { %v312_v39 = vpack.c.bf16 %v294_v38, %v291_v35 }
 0x147   :  { %1747 = dma.done.wait [#allocation3], 1024 }
 0x148   :  { %1748 = vsyncadd [#allocation3], 4294966272  ;;  %1381 = vmatpush3.bf16.msra.mxu1 %v306_v21  ;;  %v318_v40 = vld [vmem:[#allocation2] sm:$0xff]  ;;  %v1602_v42 = vld [vmem:[#allocation7 + $0x48] sm:$0xff]   ;;  %vm1758_vm0 = vmmov 0   ;;  %s1759_s14 = smov [#allocation10]  }
 0x149   :  { %1382 = vmatprep.subr.bf16.mxu1 %v307_v19  ;;  %1396 = vmatprep.mubr.bf16.mxu1 %v318_v40  ;;  %v1601_v41 = vld [vmem:[#allocation7 + $0x40] sm:$0xff]   ;;  %v1603_v43 = vld [vmem:[#allocation7 + $0x50] sm:$0xff]   ;;  %v1604_v44 = vld [vmem:[#allocation7 + $0x58] sm:$0xff]   ;;  %s1170_s15 = sshll.u32 %s1759_s14, 4  ;;  %s1171_s15 = int_to_ptr.vmem [resolvable:$true] %s1170_s15 }
 0x14a   :  { %1412 = vmatprep.subr.bf16.mxu0 %v1601_v41  ;;  %v1605_v45 = vld [vmem:[#allocation7 + $0x60] sm:$0xff]   ;;  %v1606_v46 = vld [vmem:[#allocation7 + $0x68] sm:$0xff]   ;;  %v1871_v48 = vld [vmem:[#allocation2 + $0x10] sm:$0xff]  ;;  %s1721_s16 = scalar_lea.vmem %s1171_s15, 128  ;;  %p1726_p5 = scmp.lt.s32.totalorder %s1171_s15, %s1171_s15 }
 0x14b   :  { %1413 = vmatpush3.bf16.msra.mxu0 %v1601_v41  ;;  %v1869_v47 = vld [vmem:[#allocation2 + $0x8] sm:$0xff]  ;;  %v1875_v49 = vld [vmem:[#allocation2 + $0x18] sm:$0xff]  ;;  %v1877_v50 = vld [vmem:[#allocation2 + $0x20] sm:$0xff]  ;;  %p1722_p4 = scmp.ne.s32.totalorder %s1171_s15, %s1721_s16  ;;  %p1727_p6 = scmp.lt.s32.totalorder %s1721_s16, %s1721_s16 }
 0x14c   :  { %1383 = vmatpush3.bf16.msra.mxu1 %v307_v19  ;;  %1414 = vmatprep.subr.bf16.mxu0 %v1602_v42  ;;  %v1881_v51 = vld [vmem:[#allocation2 + $0x28] sm:$0xff]  ;;  %v1883_v52 = vld [vmem:[#allocation2 + $0x30] sm:$0xff]  ;;  %v1887_v53 = vld [vmem:[#allocation2 + $0x38] sm:$0xff] }
 0x14d   :  { %1384 = vmatprep.subr.bf16.mxu1 %v308_v27  ;;  %v1607_v54 = vld [vmem:[#allocation7 + $0x70] sm:$0xff]   ;;  %v1608_v55 = vld [vmem:[#allocation7 + $0x78] sm:$0xff]   ;;  %v1202_v56 = vld [vmem:[%s1995_s3] ss:$0 sm:$0xff]  ;;  %p1728_p7 = por %p1727_p6, %p1726_p5 }
 0x14f   :  { %1415 = vmatpush3.bf16.msra.mxu0 %v1602_v42  ;;  %p1729_p8 = pnand %p1728_p7, %p1722_p4 }
 0x150   :  { %1385 = vmatpush3.bf16.msra.mxu1 %v308_v27  ;;  %1416 = vmatprep.subr.bf16.mxu0 %v1603_v43 }
 0x151   :  { %1386 = vmatprep.subr.bf16.mxu1 %v309_v25 }
 0x153   :  { %1417 = vmatpush3.bf16.msra.mxu0 %v1603_v43 }
 0x154   :  { %1387 = vmatpush3.bf16.msra.mxu1 %v309_v25  ;;  %1418 = vmatprep.subr.bf16.mxu0 %v1604_v44 }
 0x155   :  { %1388 = vmatprep.subr.bf16.mxu1 %v310_v33 }
 0x157   :  { %1419 = vmatpush3.bf16.msra.mxu0 %v1604_v44 }
 0x158   :  { %1389 = vmatpush3.bf16.msra.mxu1 %v310_v33  ;;  %1420 = vmatprep.subr.bf16.mxu0 %v1605_v45 }
 0x159   :  { %1390 = vmatprep.subr.bf16.mxu1 %v311_v31 }
 0x15b   :  { %1421 = vmatpush3.bf16.msra.mxu0 %v1605_v45 }
 0x15c   :  { %1391 = vmatpush3.bf16.msra.mxu1 %v311_v31  ;;  %1422 = vmatprep.subr.bf16.mxu0 %v1606_v46 }
 0x15d   :  { %1392 = vmatprep.subr.bf16.mxu1 %v312_v39 }
 0x15f   :  { %1423 = vmatpush3.bf16.msra.mxu0 %v1606_v46 }
 0x160   :  { %1393 = vmatpush3.bf16.msra.mxu1 %v312_v39  ;;  %1424 = vmatprep.subr.bf16.mxu0 %v1607_v54 }
 0x161   :  { %1394 = vmatprep.subr.bf16.mxu1 %v313_v37 }
 0x163   :  { %1425 = vmatpush3.bf16.msra.mxu0 %v1607_v54 }
 0x164   :  { %1395 = vmatpush3.bf16.msra.mxu1 %v313_v37  ;;  %1426 = vmatprep.subr.bf16.mxu0 %v1608_v55 }
 0x167   :  { %1397 = vmatmul.mubr.bf16.vlgmr.msra.gmra.mrb[0].mxu1 %v1869_v47  ;;  %1427 = vmatpush3.bf16.msra.mxu0 %v1608_v55 }
 0x168   :  { %1400 = vmatprep.mubr.bf16.mxu1 %v1871_v48 }
 0x16f   :  { %1401 = vmatmul.mubr.bf16.gmra.mrb[4].mxu1 %v1875_v49 }
 0x170   :  { %1404 = vmatprep.mubr.bf16.mxu1 %v1877_v50 }
 0x177   :  { %1405 = vmatmul.mubr.bf16.gmra.mrb[8].mxu1 %v1881_v51 }
 0x178   :  { %1408 = vmatprep.mubr.bf16.mxu1 %v1883_v52 }
 0x17f   :  { %1409 = vmatmul.mubr.bf16.gmra.mrb[12].mxu1 %v1887_v53 }
 0x180   :  { %1460 = vmatprep.mubr.bf16.mxu1 %v318_v40 }
 0x23a   :  { %v1398_v57 = vpop.f32.mrb[0].mxu1 }
 0x23b   :  { %v376_v58 = vadd.f32 %v1398_v57, %v1202_v56  ;;  %v367_v59 = vpop.f32.mrb[1].mxu1 }
 0x23c   :  { %v368_v60 = vadd.f32 %v1202_v56, %v367_v59  ;;  %v1399_v61 = vpop.f32.mrb[2].mxu1 }
 0x23d   :  { %v379_v62 = vadd.f32 %v1399_v61, %v1202_v56  ;;  %v370_v63 = vpop.f32.mrb[3].mxu1  ;;  %v432_v1 = vmax.f32 %v376_v58, 0.0 }
 0x23e   :  { %v371_v0 = vadd.f32 %v1202_v56, %v370_v63  ;;  %v430_v3 = vmax.f32 %v368_v60, 0.0 }
 0x23f   :  { %v433_v2 = vmax.f32 %v379_v62, 0.0 }
 0x240   :  { %v431_v4 = vmax.f32 %v371_v0, 0.0 }
 0x241   :  { %v447_v5 = vpack.c.bf16 %v433_v2, %v432_v1 }
 0x242   :  { %v1402_v6 = vpop.f32.mrb[4].mxu1  ;;  %v446_v7 = vpack.c.bf16 %v431_v4, %v430_v3 }
 0x243   :  { %v392_v8 = vadd.f32 %v1402_v6, %v1202_v56  ;;  %v383_v9 = vpop.f32.mrb[5].mxu1 }
 0x244   :  { %v384_v10 = vadd.f32 %v1202_v56, %v383_v9  ;;  %v1403_v11 = vpop.f32.mrb[6].mxu1  ;;  %1428 = vmatprep.mubr.bf16.mxu0 %v446_v7 }
 0x245   :  { %v395_v12 = vadd.f32 %v1403_v11, %v1202_v56  ;;  %v386_v13 = vpop.f32.mrb[7].mxu1  ;;  %1429 = vmatmul.mubr.bf16.vlgmr.msra.gmra.mrb[16].mxu0 %v447_v5  ;;  %v436_v15 = vmax.f32 %v392_v8, 0.0 }
 0x246   :  { %v387_v14 = vadd.f32 %v1202_v56, %v386_v13  ;;  %v434_v17 = vmax.f32 %v384_v10, 0.0 }
 0x247   :  { %v437_v16 = vmax.f32 %v395_v12, 0.0 }
 0x248   :  { %v435_v18 = vmax.f32 %v387_v14, 0.0 }
 0x249   :  { %v449_v19 = vpack.c.bf16 %v437_v16, %v436_v15  ;;  %v1757_v16 = vmov 0.0  }
 0x24a   :  { %v448_v20 = vpack.c.bf16 %v435_v18, %v434_v17  ;;  %v1406_v21 = vpop.f32.mrb[8].mxu1  ;;  %1476 = vmatprep.subr.bf16.mxu0 %v1757_v16 }
 0x24b   :  { %v408_v22 = vadd.f32 %v1406_v21, %v1202_v56  ;;  %v399_v23 = vpop.f32.mrb[9].mxu1 }
 0x24c   :  { %v400_v24 = vadd.f32 %v1202_v56, %v399_v23  ;;  %v1407_v25 = vpop.f32.mrb[10].mxu1  ;;  %1432 = vmatprep.mubr.bf16.mxu0 %v448_v20 }
 0x24d   :  { %v411_v26 = vadd.f32 %v1407_v25, %v1202_v56  ;;  %v402_v27 = vpop.f32.mrb[11].mxu1  ;;  %1433 = vmatmul.mubr.bf16.gmra.mrb[20].mxu0 %v449_v19  ;;  %v440_v29 = vmax.f32 %v408_v22, 0.0 }
 0x24e   :  { %v403_v28 = vadd.f32 %v1202_v56, %v402_v27  ;;  %v438_v31 = vmax.f32 %v400_v24, 0.0 }
 0x24f   :  { %v441_v30 = vmax.f32 %v411_v26, 0.0 }
 0x250   :  { %v439_v32 = vmax.f32 %v403_v28, 0.0 }
 0x251   :  { %v451_v33 = vpack.c.bf16 %v441_v30, %v440_v29 }
 0x252   :  { %v450_v34 = vpack.c.bf16 %v439_v32, %v438_v31  ;;  %v1410_v35 = vpop.f32.mrb[12].mxu1 }
 0x253   :  { %v424_v36 = vadd.f32 %v1410_v35, %v1202_v56  ;;  %v415_v37 = vpop.f32.mrb[13].mxu1 }
 0x254   :  { %v416_v38 = vadd.f32 %v1202_v56, %v415_v37  ;;  %v1411_v39 = vpop.f32.mrb[14].mxu1  ;;  %1436 = vmatprep.mubr.bf16.mxu0 %v450_v34 }
 0x255   :  { %v427_v40 = vadd.f32 %v1411_v39, %v1202_v56  ;;  %v418_v41 = vpop.f32.mrb[15].mxu1  ;;  %1437 = vmatmul.mubr.bf16.gmra.mrb[24].mxu0 %v451_v33  ;;  %v444_v43 = vmax.f32 %v424_v36, 0.0 }
 0x256   :  { %v419_v42 = vadd.f32 %v1202_v56, %v418_v41  ;;  %v442_v45 = vmax.f32 %v416_v38, 0.0 }
 0x257   :  { %v445_v44 = vmax.f32 %v427_v40, 0.0 }
 0x258   :  { %v443_v46 = vmax.f32 %v419_v42, 0.0 }
 0x259   :  { %v453_v54 = vpack.c.bf16 %v445_v44, %v444_v43 }
 0x25a   :  { %v452_v55 = vpack.c.bf16 %v443_v46, %v442_v45 }
 0x25c   :  { %1440 = vmatprep.mubr.bf16.mxu0 %v452_v55 }
 0x25d   :  { %1441 = vmatmul.mubr.bf16.gmra.mrb[28].mxu0 %v453_v54 }
 0x25e   :  { %1492 = vmatprep.mubr.msk.bf16.mxu0 %vm1758_vm0, %v1757_v16 }
 0x318   :  { %v1430_v57 = vpop.f32.mrb[16].mxu0 }
 0x319   :  { %v553_v58 = vpop.f32.mrb[17].mxu0 }
 0x31a   :  { %v1431_v59 = vpop.f32.mrb[18].mxu0 }
 0x31b   :  { %v617_v60 = vpack.c.bf16 %v1431_v59, %v1430_v57  ;;  %v556_v61 = vpop.f32.mrb[19].mxu0 }
 0x31c   :  { %v616_v62 = vpack.c.bf16 %v556_v61, %v553_v58 }
 0x31e   :  { %1444 = vmatprep.subr.bf16.mxu1 %v616_v62 }
 0x31f   :  { %1445 = vmatpush3.bf16.msra.mxu1 %v616_v62 }
 0x320   :  { %v1434_v63 = vpop.f32.mrb[20].mxu0  ;;  %1446 = vmatprep.subr.bf16.mxu1 %v617_v60 }
 0x321   :  { %v569_v0 = vpop.f32.mrb[21].mxu0 }
 0x322   :  { %v1435_v56 = vpop.f32.mrb[22].mxu0 }
 0x323   :  { %v619_v1 = vpack.c.bf16 %v1435_v56, %v1434_v63  ;;  %v572_v2 = vpop.f32.mrb[23].mxu0  ;;  %1447 = vmatpush3.bf16.msra.mxu1 %v617_v60 }
 0x324   :  { %v618_v3 = vpack.c.bf16 %v572_v2, %v569_v0 }
 0x326   :  { %1448 = vmatprep.subr.bf16.mxu1 %v618_v3 }
 0x327   :  { %1449 = vmatpush3.bf16.msra.mxu1 %v618_v3 }
 0x328   :  { %v1438_v4 = vpop.f32.mrb[24].mxu0  ;;  %1450 = vmatprep.subr.bf16.mxu1 %v619_v1 }
 0x329   :  { %v585_v5 = vpop.f32.mrb[25].mxu0 }
 0x32a   :  { %v1439_v6 = vpop.f32.mrb[26].mxu0 }
 0x32b   :  { %v621_v7 = vpack.c.bf16 %v1439_v6, %v1438_v4  ;;  %v588_v8 = vpop.f32.mrb[27].mxu0  ;;  %1451 = vmatpush3.bf16.msra.mxu1 %v619_v1 }
 0x32c   :  { %v620_v9 = vpack.c.bf16 %v588_v8, %v585_v5 }
 0x32e   :  { %1452 = vmatprep.subr.bf16.mxu1 %v620_v9 }
 0x32f   :  { %1453 = vmatpush3.bf16.msra.mxu1 %v620_v9 }
 0x330   :  { %v1442_v10 = vpop.f32.mrb[28].mxu0  ;;  %1454 = vmatprep.subr.bf16.mxu1 %v621_v7 }
 0x331   :  { %v601_v11 = vpop.f32.mrb[29].mxu0 }
 0x332   :  { %v1443_v12 = vpop.f32.mrb[30].mxu0 }
 0x333   :  { %v623_v13 = vpack.c.bf16 %v1443_v12, %v1442_v10  ;;  %v604_v14 = vpop.f32.mrb[31].mxu0  ;;  %1455 = vmatpush3.bf16.msra.mxu1 %v621_v7  ;;  %v794_v10 = vld [vmem:[%s1997_s5] sm:$0xf] }
 0x334   :  { %v622_v15 = vpack.c.bf16 %v604_v14, %v601_v11  ;;  %v753_v11 = vld [vmem:[%s1996_s4] sm:$0xf]  ;;  %v1611_v14 = vld [vmem:[#allocation9 + $0x48] sm:$0xff]  }
 0x335   :  { %v1609_v12 = vld [vmem:[#allocation9 + $0x40] sm:$0xff]  }
 0x336   :  { %1456 = vmatprep.subr.bf16.mxu1 %v622_v15 }
 0x337   :  { %1457 = vmatpush3.bf16.msra.mxu1 %v622_v15  ;;  %v1612_v15 = vld [vmem:[#allocation9 + $0x8] sm:$0xff]  }
 0x338   :  { %1458 = vmatprep.subr.bf16.mxu1 %v623_v13 }
 0x33b   :  { %1459 = vmatpush3.bf16.msra.mxu1 %v623_v13  ;;  %v1610_v13 = vld [vmem:[#allocation9] sm:$0xff]  }
 0x33c   :  { %1496 = vmatprep.subr.bf16.mxu1 %v1757_v16 }
 0x33e   :  { %1461 = vmatmul.mubr.bf16.vlgmr.msra.gmra.mrb[16].mxu1 %v1869_v47  ;;  %v1909_v47 = vld [vmem:[%s1995_s3 + $0x1] ss:$0 sm:$0xff] }
 0x33f   :  { %1464 = vmatprep.mubr.bf16.mxu1 %v1871_v48 }
 0x346   :  { %1465 = vmatmul.mubr.bf16.gmra.mrb[20].mxu1 %v1875_v49 }
 0x347   :  { %1468 = vmatprep.mubr.bf16.mxu1 %v1877_v50 }
 0x34e   :  { %1469 = vmatmul.mubr.bf16.gmra.mrb[24].mxu1 %v1881_v51 }
 0x34f   :  { %1472 = vmatprep.mubr.bf16.mxu1 %v1883_v52 }
 0x356   :  { %1473 = vmatmul.mubr.bf16.gmra.mrb[28].mxu1 %v1887_v53 }
 0x357   :  { %1512 = vmatprep.mubr.msk.bf16.mxu1 %vm1758_vm0, %v1757_v16 }
 0x411   :  { %v1462_v48 = vpop.f32.mrb[16].mxu1 }
 0x412   :  { %v675_v49 = vadd.f32 %v1462_v48, %v1909_v47  ;;  %v666_v50 = vpop.f32.mrb[17].mxu1  ;;  %v1614_v48 = vld [vmem:[#allocation9 + $0x10] sm:$0xff]  }
 0x413   :  { %v667_v51 = vadd.f32 %v1909_v47, %v666_v50  ;;  %v1463_v52 = vpop.f32.mrb[18].mxu1  ;;  %v1616_v50 = vld [vmem:[#allocation9 + $0x18] sm:$0xff]  }
 0x414   :  { %v678_v53 = vadd.f32 %v1463_v52, %v1909_v47  ;;  %v669_v17 = vpop.f32.mrb[19].mxu1  ;;  %v731_v19 = vmax.f32 %v675_v49, 0.0  ;;  %v1615_v49 = vld [vmem:[#allocation9 + $0x58] sm:$0xff]   ;;  %v1618_v52 = vld [vmem:[#allocation9 + $0x20] sm:$0xff]  }
 0x415   :  { %v670_v18 = vadd.f32 %v1909_v47, %v669_v17  ;;  %v729_v21 = vmax.f32 %v667_v51, 0.0  ;;  %v1617_v51 = vld [vmem:[#allocation9 + $0x60] sm:$0xff]   ;;  %v1620_v17 = vld [vmem:[#allocation9 + $0x28] sm:$0xff]  }
 0x416   :  { %v732_v20 = vmax.f32 %v678_v53, 0.0  ;;  %v1619_v53 = vld [vmem:[#allocation9 + $0x68] sm:$0xff]  }
 0x417   :  { %v730_v22 = vmax.f32 %v670_v18, 0.0  ;;  %v1621_v18 = vld [vmem:[#allocation9 + $0x70] sm:$0xff]  }
 0x418   :  { %v746_v23 = vpack.c.bf16 %v732_v20, %v731_v19  ;;  %v1622_v19 = vld [vmem:[#allocation9 + $0x30] sm:$0xff]   ;;  %v1623_v20 = vld [vmem:[#allocation9 + $0x78] sm:$0xff]  }
 0x419   :  { %v745_v24 = vpack.c.bf16 %v730_v22, %v729_v21  ;;  %v1466_v25 = vpop.f32.mrb[20].mxu1  ;;  %v1624_v21 = vld [vmem:[#allocation9 + $0x38] sm:$0xff]  }
 0x41a   :  { %v691_v26 = vadd.f32 %v1466_v25, %v1909_v47  ;;  %v682_v27 = vpop.f32.mrb[21].mxu1 }
 0x41b   :  { %v683_v28 = vadd.f32 %v1909_v47, %v682_v27  ;;  %v1467_v29 = vpop.f32.mrb[22].mxu1  ;;  %1477 = vmatpush3.bf16.msra.mxu0 %v745_v24  ;;  %1497 = vmatpush3.bf16.msra.mxu1 %v745_v24  ;;  %v1625_v24 = vld [vmem:[#allocation9 + $0x80] sm:$0xff]  }
 0x41c   :  { %v694_v30 = vadd.f32 %v1467_v29, %v1909_v47  ;;  %v685_v31 = vpop.f32.mrb[23].mxu1  ;;  %1478 = vmatprep.subr.bf16.mxu0 %v1757_v16  ;;  %1498 = vmatprep.subr.bf16.mxu1 %v1757_v16  ;;  %v735_v33 = vmax.f32 %v691_v26, 0.0 }
 0x41d   :  { %v686_v32 = vadd.f32 %v1909_v47, %v685_v31  ;;  %v733_v35 = vmax.f32 %v683_v28, 0.0 }
 0x41e   :  { %v736_v34 = vmax.f32 %v694_v30, 0.0 }
 0x41f   :  { %v734_v36 = vmax.f32 %v686_v32, 0.0  ;;  %1479 = vmatpush3.bf16.msra.mxu0 %v746_v23  ;;  %1499 = vmatpush3.bf16.msra.mxu1 %v746_v23 }
 0x420   :  { %v748_v37 = vpack.c.bf16 %v736_v34, %v735_v33  ;;  %1480 = vmatprep.subr.bf16.mxu0 %v1757_v16  ;;  %1500 = vmatprep.subr.bf16.mxu1 %v1757_v16  ;;  %v1626_v34 = vld [vmem:[#allocation9 + $0x88] sm:$0xff]  }
 0x421   :  { %v747_v38 = vpack.c.bf16 %v734_v36, %v733_v35  ;;  %v1470_v39 = vpop.f32.mrb[24].mxu1  ;;  %v1627_v35 = vld [vmem:[#allocation9 + $0x90] sm:$0xff]   ;;  %v1628_v36 = vld [vmem:[#allocation9 + $0x98] sm:$0xff]  }
 0x422   :  { %v707_v40 = vadd.f32 %v1470_v39, %v1909_v47  ;;  %v698_v41 = vpop.f32.mrb[25].mxu1  ;;  %v1631_v39 = vld [vmem:[#allocation9 + $0xb0] sm:$0xff]  }
 0x423   :  { %v699_v42 = vadd.f32 %v1909_v47, %v698_v41  ;;  %v1471_v43 = vpop.f32.mrb[26].mxu1  ;;  %1481 = vmatpush3.bf16.msra.mxu0 %v747_v38  ;;  %1501 = vmatpush3.bf16.msra.mxu1 %v747_v38  ;;  %v1630_v38 = vld [vmem:[#allocation9 + $0xa8] sm:$0xff]  }
 0x424   :  { %v710_v44 = vadd.f32 %v1471_v43, %v1909_v47  ;;  %v701_v45 = vpop.f32.mrb[27].mxu1  ;;  %1482 = vmatprep.subr.bf16.mxu0 %v1757_v16  ;;  %1502 = vmatprep.subr.bf16.mxu1 %v1757_v16  ;;  %v739_v54 = vmax.f32 %v707_v40, 0.0  ;;  %v1632_v40 = vld [vmem:[#allocation9 + $0xb8] sm:$0xff]  }
 0x425   :  { %v702_v46 = vadd.f32 %v1909_v47, %v701_v45  ;;  %v737_v57 = vmax.f32 %v699_v42, 0.0 }
 0x426   :  { %v740_v55 = vmax.f32 %v710_v44, 0.0 }
 0x427   :  { %v738_v58 = vmax.f32 %v702_v46, 0.0  ;;  %1483 = vmatpush3.bf16.msra.mxu0 %v748_v37  ;;  %1503 = vmatpush3.bf16.msra.mxu1 %v748_v37  ;;  %v1629_v37 = vld [vmem:[#allocation9 + $0xa0] sm:$0xff]  }
 0x428   :  { %v750_v59 = vpack.c.bf16 %v740_v55, %v739_v54  ;;  %1484 = vmatprep.subr.bf16.mxu0 %v1757_v16  ;;  %1504 = vmatprep.subr.bf16.mxu1 %v1757_v16 }
 0x429   :  { %v749_v60 = vpack.c.bf16 %v738_v58, %v737_v57  ;;  %v1474_v61 = vpop.f32.mrb[28].mxu1 }
 0x42a   :  { %v723_v62 = vadd.f32 %v1474_v61, %v1909_v47  ;;  %v714_v63 = vpop.f32.mrb[29].mxu1  ;;  %v1237_v61 = vld [vmem:[%s1999_s7] ss:$0 sm:$0xff] }
 0x42b   :  { %v715_v0 = vadd.f32 %v1909_v47, %v714_v63  ;;  %v1475_v56 = vpop.f32.mrb[30].mxu1  ;;  %1485 = vmatpush3.bf16.msra.mxu0 %v749_v60  ;;  %1505 = vmatpush3.bf16.msra.mxu1 %v749_v60 }
 0x42c   :  { %v726_v1 = vadd.f32 %v1475_v56, %v1909_v47  ;;  %v717_v2 = vpop.f32.mrb[31].mxu1  ;;  %1486 = vmatprep.subr.bf16.mxu0 %v1757_v16  ;;  %1506 = vmatprep.subr.bf16.mxu1 %v1757_v16  ;;  %v743_v4 = vmax.f32 %v723_v62, 0.0 }
 0x42d   :  { %v718_v3 = vadd.f32 %v1909_v47, %v717_v2  ;;  %v741_v6 = vmax.f32 %v715_v0, 0.0  ;;  %v1613_v47 = vld [vmem:[#allocation9 + $0x50] sm:$0xff]  }
 0x42e   :  { %v744_v5 = vmax.f32 %v726_v1, 0.0 }
 0x42f   :  { %v742_v7 = vmax.f32 %v718_v3, 0.0  ;;  %1487 = vmatpush3.bf16.msra.mxu0 %v750_v59  ;;  %1507 = vmatpush3.bf16.msra.mxu1 %v750_v59 }
 0x430   :  { %v752_v8 = vpack.c.bf16 %v744_v5, %v743_v4  ;;  %1488 = vmatprep.subr.bf16.mxu0 %v1757_v16  ;;  %1508 = vmatprep.subr.bf16.mxu1 %v1757_v16 }
 0x431   :  { %v751_v9 = vpack.c.bf16 %v742_v7, %v741_v6 }
 0x433   :  { %1489 = vmatpush3.bf16.msra.mxu0 %v751_v9  ;;  %1509 = vmatpush3.bf16.msra.mxu1 %v751_v9 }
 0x434   :  { %1490 = vmatprep.subr.bf16.mxu0 %v1757_v16  ;;  %1510 = vmatprep.subr.bf16.mxu1 %v1757_v16 }
 0x437   :  { %1491 = vmatpush3.bf16.msra.mxu0 %v752_v8  ;;  %1511 = vmatpush3.bf16.msra.mxu1 %v752_v8 }
 0x438   :  { %1516 = vmatprep.subr.bf16.mxu0 %v1757_v16  ;;  %1536 = vmatprep.subr.bf16.mxu1 %v1757_v16 }
 0x43a   :  { %1513 = vmatmul.mubr.bf16.vlgmr.msra.gmra.mrb[32].mxu1 %v794_v10  ;;  %1493 = vmatmul.mubr.bf16.vlgmr.msra.gmra.mrb[32].mxu0 %v753_v11 }
 0x43b   :  { %1517 = vmatpush3.bf16.msra.mxu0 %v1609_v12  ;;  %1537 = vmatpush3.bf16.msra.mxu1 %v1610_v13 }
 0x43c   :  { %1518 = vmatprep.subr.bf16.mxu0 %v1757_v16  ;;  %1538 = vmatprep.subr.bf16.mxu1 %v1757_v16 }
 0x43d   :  { %1532 = vmatprep.mubr.msk.bf16.mxu0 %vm1758_vm0, %v1757_v16  ;;  %1552 = vmatprep.mubr.msk.bf16.mxu1 %vm1758_vm0, %v1757_v16 }
 0x43f   :  { %1519 = vmatpush3.bf16.msra.mxu0 %v1611_v14  ;;  %1539 = vmatpush3.bf16.msra.mxu1 %v1612_v15 }
 0x440   :  { %1520 = vmatprep.subr.bf16.mxu0 %v1757_v16  ;;  %1540 = vmatprep.subr.bf16.mxu1 %v1757_v16 }
 0x443   :  { %1521 = vmatpush3.bf16.msra.mxu0 %v1613_v47  ;;  %1541 = vmatpush3.bf16.msra.mxu1 %v1614_v48 }
 0x444   :  { %1522 = vmatprep.subr.bf16.mxu0 %v1757_v16  ;;  %1542 = vmatprep.subr.bf16.mxu1 %v1757_v16 }
 0x447   :  { %1523 = vmatpush3.bf16.msra.mxu0 %v1615_v49  ;;  %1543 = vmatpush3.bf16.msra.mxu1 %v1616_v50 }
 0x448   :  { %1524 = vmatprep.subr.bf16.mxu0 %v1757_v16  ;;  %1544 = vmatprep.subr.bf16.mxu1 %v1757_v16 }
 0x44b   :  { %1525 = vmatpush3.bf16.msra.mxu0 %v1617_v51  ;;  %1545 = vmatpush3.bf16.msra.mxu1 %v1618_v52 }
 0x44c   :  { %1526 = vmatprep.subr.bf16.mxu0 %v1757_v16  ;;  %1546 = vmatprep.subr.bf16.mxu1 %v1757_v16 }
 0x44f   :  { %1527 = vmatpush3.bf16.msra.mxu0 %v1619_v53  ;;  %1547 = vmatpush3.bf16.msra.mxu1 %v1620_v17 }
 0x450   :  { %1528 = vmatprep.subr.bf16.mxu0 %v1757_v16  ;;  %1548 = vmatprep.subr.bf16.mxu1 %v1757_v16 }
 0x453   :  { %1529 = vmatpush3.bf16.msra.mxu0 %v1621_v18  ;;  %1549 = vmatpush3.bf16.msra.mxu1 %v1622_v19 }
 0x454   :  { %1530 = vmatprep.subr.bf16.mxu0 %v1757_v16  ;;  %1550 = vmatprep.subr.bf16.mxu1 %v1757_v16 }
 0x457   :  { %1531 = vmatpush3.bf16.msra.mxu0 %v1623_v20  ;;  %1551 = vmatpush3.bf16.msra.mxu1 %v1624_v21 }
 0x458   :  { %1556 = vmatprep.subr.bf16.mxu0 %v1757_v16 }
 0x50d   :  { %v829_v22 = vpop.f32.mrb[32].mxu1  ;;  %v788_v23 = vpop.f32.mrb[32].mxu0 }
 0x50e   :  { %v854_v25 = vpack.c.bf16 %v829_v22, %v829_v22  ;;  %v835_v26 = vsub.f32 %v788_v23, %v829_v22  ;;  %v837_v27 = vpack.c.bf16 %v788_v23, %v788_v23  ;;  %v1514_v28 = vpop.f32.mrb[33].mxu1  ;;  %v1494_v29 = vpop.f32.mrb[33].mxu0 }
 0x50f   :  { %v832_v30 = vpop.f32.mrb[34].mxu1  ;;  %v791_v31 = vpop.f32.mrb[34].mxu0 }
 0x510   :  { %v1515_v32 = vpop.f32.mrb[35].mxu1  ;;  %1533 = vmatmul.mubr.bf16.vlgmr.msra.gmra.mrb[36].mxu0 %v854_v25  ;;  %1553 = vmatmul.mubr.bf16.vlgmr.msra.gmra.mrb[36].mxu1 %v837_v27  ;;  %v1495_v33 = vpop.f32.mrb[35].mxu0  ;;  %v836_v41 = vand.u32 2147483647, %v835_v26 }
 0x511   :  { %1557 = vmatpush3.bf16.msra.mxu0 %v1625_v24  ;;  %1572 = vmatprep.mubr.msk.bf16.mxu0 %vm1758_vm0, %v1757_v16 }
 0x512   :  { %1558 = vmatprep.subr.bf16.mxu0 %v1757_v16  ;;  %v1048_v42 = vpack.c.bf16 %v836_v41, %v836_v41 }
 0x515   :  { %1559 = vmatpush3.bf16.msra.mxu0 %v1626_v34 }
 0x516   :  { %1560 = vmatprep.subr.bf16.mxu0 %v1757_v16 }
 0x519   :  { %1561 = vmatpush3.bf16.msra.mxu0 %v1627_v35 }
 0x51a   :  { %1562 = vmatprep.subr.bf16.mxu0 %v1757_v16 }
 0x51d   :  { %1563 = vmatpush3.bf16.msra.mxu0 %v1628_v36 }
 0x51e   :  { %1564 = vmatprep.subr.bf16.mxu0 %v1757_v16 }
 0x521   :  { %1565 = vmatpush3.bf16.msra.mxu0 %v1629_v37 }
 0x522   :  { %1566 = vmatprep.subr.bf16.mxu0 %v1757_v16 }
 0x525   :  { %1567 = vmatpush3.bf16.msra.mxu0 %v1630_v38 }
 0x526   :  { %1568 = vmatprep.subr.bf16.mxu0 %v1757_v16 }
 0x529   :  { %1569 = vmatpush3.bf16.msra.mxu0 %v1631_v39 }
 0x52a   :  { %1570 = vmatprep.subr.bf16.mxu0 %v1757_v16 }
 0x52d   :  { %1571 = vmatpush3.bf16.msra.mxu0 %v1632_v40 }
 0x530   :  { %1573 = vmatmul.mubr.bf16.vlgmr.msra.gmra.mrb[40].mxu0 %v1048_v42 }
 0x5e3   :  { %v954_v43 = vpop.f32.mrb[36].mxu0  ;;  %v1042_v44 = vpop.f32.mrb[36].mxu1 }
 0x5e4   :  { %v1534_v45 = vpop.f32.mrb[37].mxu0  ;;  %v1043_v46 = vadd.f32 %v1042_v44, %v954_v43  ;;  %v1554_v54 = vpop.f32.mrb[37].mxu1 }
 0x5e5   :  { %v957_v55 = vpop.f32.mrb[38].mxu0  ;;  %v1045_v57 = vpop.f32.mrb[38].mxu1 }
 0x5e6   :  { %v1535_v58 = vpop.f32.mrb[39].mxu0  ;;  %v1555_v59 = vpop.f32.mrb[39].mxu1 }
 0x603   :  { %v1148_v60 = vpop.f32.mrb[40].mxu0 }
 0x604   :  { %v1154_v16 = vadd.f32 %v1148_v60, %v1043_v46  ;;  %v1574_v62 = vpop.f32.mrb[41].mxu0 }
 0x605   :  { %v1151_v63 = vpop.f32.mrb[42].mxu0 }
 0x606   :  { %v1162_v0 = vadd.f32 %v1237_v61, %v1154_v16  ;;  %v1575_v56 = vpop.f32.mrb[43].mxu0 }
 0x608   :  { %1163 = vst [vmem:[#allocation10] sm:$0xff] %v1162_v0 }
 0x609   :  { %1732 = shalt.err (!%p1729_p8)
}
 0x60a   :  { %s1733_s7 = scalar_lea.hbm %s2000_s8, 128 }
 0x60b   :  { %p1734_p9 = scmp.ne.s32.totalorder %s2000_s8, %s1733_s7  ;;  %p1737_p10 = scmp.lt.u32.totalorder %s1733_s7, %s2000_s8 }
 0x60d   :  { %p1739_p11 = pnand %p1737_p10, %p1734_p9 }
 0x60f   :  { %1742 = shalt.err (!%p1739_p11)
}
 0x610   :  { %1173 = dma.vmem_to_hbm [thread:$0]  %s1171_s15, 128, %s2000_s8, [#allocation6]  }
 0x611   :  { %1749 = dma.done.wait [#allocation6], 128  }
 0x612   :  { %1750 = vsyncadd [#allocation6], 4294967168 }
 0x613   :  { %1177 = vsyncpa [#allocation5], 1 }
 0x614   :  { %1178 = vsyncpa [#allocation8], 1 }
 0x615   :  { %1179 = vsyncpa [#allocation6], 1 }
 0x616   :  { %1180 = vsyncmov [#allocation3] }
 0x619   :  { %s1181_s22 = vpop.sfrf %1180 }
 0x61a   :  { %p1238_p12 = scmp.ne.s32.totalorder %s1181_s22, 0 }
 0x61c   :  { %1185 = shalt.err (%p1238_p12)  }

</bundles_post_ra>
